<compile_context>
chip_gen: v7x
topology: tpu7x:2x2x1
jax: 0.10.0
libtpu: 0.0.40
codegen_flags: <defaults>
</compile_context>

<pallas_src>
import jax
import jax.numpy as jnp
from jax.experimental import pallas as pl
from jax.experimental.pallas import tpu as pltpu  # noqa: F401  (TPU backend)

# ---------------- configuration ----------------
N, H, W = 2, 16, 16
IN_CH, OUT_CH = 8, 8
RATIO_GIN, RATIO_GOUT = 0.5, 0.0
IN_CG = int(IN_CH * RATIO_GIN)          # 4 (global input channels)
IN_CL = IN_CH - IN_CG                   # 4 (local  input channels)
OUT_CG = int(OUT_CH * RATIO_GOUT)       # 0
OUT_CL = OUT_CH - OUT_CG                # 8
KSIZE, PAD = 3, 1
EPS = 1e-5

M = N * H * W                           # 512 output pixels (lane axis of output)
K = IN_CG * KSIZE * KSIZE               # 36  real contraction depth
K_PAD = 40                              # 36 taps + 1 bias row + 3 zero rows (mult. of 8)

assert M % 128 == 0, "output lane axis must stay a multiple of 128"
assert K_PAD % 8 == 0 and K_PAD >= K + 1


# ---------------- Pallas kernel ----------------
def ffc_bn_act_kernel(p_ref, w_ref, o_ref):
    # Single fused MXU matmul; BN scale is pre-folded into the weight and the BN
    # bias rides along as a "ones" row of the patch slab (column K of the weight),
    # so no separate bias ref / VPU add is needed.
    #   y[OUT_CL, M] = W_aug[OUT_CL, K_PAD] @ patches_aug[K_PAD, M]
    # Output tile is lane-dense (last dim = 512, multiple of 128) -> unmasked vst.
    y = jnp.dot(w_ref[...], p_ref[...], preferred_element_type=jnp.float32)
    o_ref[...] = jnp.maximum(y, 0.0)                 # fused ReLU


# ---------------- wrapper (runs fully under jit) ----------------
def _im2col_t(x_nchw):
    """(N, C, H, W) -> reflect pad -> transposed patches (C*KH*KW, N*H*W).

    Row order (c, kh, kw) matches w.reshape(OUT_CL, C*KH*KW); columns in (n, h, w)
    order so the kernel output is directly (C_out, N*H*W).
    """
    xpad = jnp.pad(x_nchw, ((0, 0), (0, 0), (PAD, PAD), (PAD, PAD)), mode="reflect")
    taps = [xpad[:, :, kh:kh + H, kw:kw + W]            # each (N, C, H, W)
            for kh in range(KSIZE) for kw in range(KSIZE)]
    p = jnp.stack(taps, axis=2)                         # (N, C, 9, H, W)
    p = p.transpose(1, 2, 0, 3, 4)                      # (C, 9, N, H, W)
    return p.reshape(K, M)                              # (36, 512)


def ffc_bn_act_forward(x_l, x_g, w_g2l, bn_gamma, bn_beta, bn_mean, bn_var):
    """Returns (x_l_out, x_g_out) mirroring FFC_BN_ACT.forward (x_g_out stays 0)."""
    # ratio_gout == 0 path: out_xl = convg2l(x_l) + convg2l(x_g) * 1.
    # conv is linear & bias-free -> sum the inputs once, convolve once.
    x_sum = x_l + x_g
    patches_t = _im2col_t(x_sum)                                        # (36, 512)

    # Augment to K_PAD rows: [taps | ones (bias) | zeros (sublane pad)].
    patches_aug = jnp.concatenate(
        [patches_t,
         jnp.ones((1, M), jnp.float32),
         jnp.zeros((K_PAD - K - 1, M), jnp.float32)], axis=0)           # (40, 512)

    # Fold inference-mode BatchNorm2d into conv weight + a bias column (exact).
    # TODO(synk): training-mode BN (batch statistics) would need a two-pass reduction.
    scale = bn_gamma * jax.lax.rsqrt(bn_var + EPS)                      # (OUT_CL,)
    w_fold = (w_g2l.reshape(OUT_CL, K) * scale[:, None]).astype(jnp.float32)
    bias_col = (bn_beta - bn_mean * scale).reshape(OUT_CL, 1).astype(jnp.float32)
    w_aug = jnp.concatenate(
        [w_fold, bias_col, jnp.zeros((OUT_CL, K_PAD - K - 1), jnp.float32)],
        axis=1)                                                         # (8, 40)

    out_t = pl.pallas_call(
        ffc_bn_act_kernel,
        out_shape=jax.ShapeDtypeStruct((OUT_CL, M), jnp.float32),
        grid=(1,),                                       # single step: whole problem
        in_specs=[
            pl.BlockSpec((K_PAD, M), lambda i: (0, 0)),      # patch slab (lane-dense)
            pl.BlockSpec((OUT_CL, K_PAD), lambda i: (0, 0)),  # folded weight + bias
        ],
        out_specs=pl.BlockSpec((OUT_CL, M), lambda i: (0, 0)),
        cost_estimate=pl.CostEstimate(
            flops=2 * OUT_CL * K_PAD * M,
            transcendentals=0,
            bytes_accessed=(K_PAD * M + OUT_CL * K_PAD + OUT_CL * M) * 4),
    )(patches_aug, w_aug)

    x_l_out = out_t.reshape(OUT_CL, N, H, W).transpose(1, 0, 2, 3)      # back to NCHW
    x_g_out = 0   # ratio_gout == 0: out_xg stays 0; bn_g/act_g are Identity
    return x_l_out, x_g_out


# ---------------- pure-JAX reference (unfused, for verification) ----------------
def _reference(x_l, x_g, w_g2l, gamma, beta, mean, var):
    def conv(x):
        xpad = jnp.pad(x, ((0, 0), (0, 0), (PAD, PAD), (PAD, PAD)), mode="reflect")
        return jax.lax.conv_general_dilated(
            xpad, w_g2l, window_strides=(1, 1), padding="VALID",
            dimension_numbers=("NCHW", "OIHW", "NCHW"))
    out_xl = conv(x_l) + conv(x_g) * 1.0
    scale = (gamma / jnp.sqrt(var + EPS)).reshape(1, OUT_CL, 1, 1)
    shift = (beta - mean * gamma / jnp.sqrt(var + EPS)).reshape(1, OUT_CL, 1, 1)
    return jnp.maximum(out_xl * scale + shift, 0.0)


if __name__ == "__main__":
    key = jax.random.PRNGKey(0)
    k_xl, k_xg, k_w, k_g, k_b, k_m, k_v = jax.random.split(key, 7)

    # tuple input (x_l, x_g) as in FFC.forward
    x_l = jax.random.normal(k_xl, (N, IN_CL, H, W), dtype=jnp.float32)
    x_g = jax.random.normal(k_xg, (N, IN_CG, H, W), dtype=jnp.float32)

    # deterministic synthetic parameters (no checkpoint)
    w_g2l = 0.1 * jax.random.normal(k_w, (OUT_CL, IN_CG, KSIZE, KSIZE), jnp.float32)
    bn_gamma = 1.0 + 0.1 * jax.random.normal(k_g, (OUT_CL,), jnp.float32)
    bn_beta = 0.1 * jax.random.normal(k_b, (OUT_CL,), jnp.float32)
    bn_mean = 0.05 * jax.random.normal(k_m, (OUT_CL,), jnp.float32)
    bn_var = 1.0 + 0.1 * jax.nn.softplus(jax.random.normal(k_v, (OUT_CL,), jnp.float32))

    # Jit the whole forward: im2col / BN-fold prologue and NCHW-recovery epilogue
    # fuse into single XLA ops around the Pallas custom call.
    fwd = jax.jit(ffc_bn_act_forward)

    out_l, out_g = fwd(x_l, x_g, w_g2l, bn_gamma, bn_beta, bn_mean, bn_var)
    out_l = jax.block_until_ready(out_l)

    ref_l = _reference(x_l, x_g, w_g2l, bn_gamma, bn_beta, bn_mean, bn_var)
    assert out_l.shape == (N, OUT_CL, H, W)
    assert out_g == 0
    assert jnp.allclose(out_l, ref_l, atol=1e-4, rtol=1e-4), "mismatch vs reference"

    print("KERNEL_OK")
</pallas_src>

<mosaic_0001>
module attributes {stable_mosaic.version = 11 : i64} {
  func.func @ffc_bn_act_kernel(%arg0: i32, %arg1: memref<40x512xf32, #tpu.memory_space<vmem>>, %arg2: memref<8x40xf32, #tpu.memory_space<vmem>>, %arg3: memref<8x512xf32, #tpu.memory_space<vmem>>) attributes {dimension_semantics = [#tpu.dimension_semantics<arbitrary>], iteration_bounds = array<i64: 1>, scalar_prefetch = 0 : i64, scratch_operands = 0 : i64, tpu.core_type = #tpu.core_type<tc>, window_params = [{pipeline_mode = #tpu.pipeline_mode<synchronous>, transform_indices = @transform_0, window_bounds = array<i64: 40, 512>}, {pipeline_mode = #tpu.pipeline_mode<synchronous>, transform_indices = @transform_1, window_bounds = array<i64: 8, 40>}, {pipeline_mode = #tpu.pipeline_mode<synchronous>, transform_indices = @transform_2, window_bounds = array<i64: 8, 512>}]} {
    %c0 = arith.constant 0 : index
    %c0_0 = arith.constant 0 : index
    %0 = vector.load %arg2[%c0, %c0_0] : memref<8x40xf32, #tpu.memory_space<vmem>>, vector<8x40xf32>
    %c0_1 = arith.constant 0 : index
    %c0_2 = arith.constant 0 : index
    %1 = vector.load %arg1[%c0_1, %c0_2] : memref<40x512xf32, #tpu.memory_space<vmem>>, vector<40x512xf32>
    %cst = arith.constant dense<0.000000e+00> : vector<8x512xf32>
    %2 = tpu.matmul %0, %1, %cst {dimension_numbers = #tpu.dot_dimension_numbers<[1], [0], [0], [1], [0, 0, 1, 1], [], []>} : vector<8x40xf32>, vector<40x512xf32>, vector<8x512xf32> -> vector<8x512xf32>
    %cst_3 = arith.constant 0.000000e+00 : f32
    %3 = vector.broadcast %cst_3 : f32 to vector<8x512xf32>
    %4 = arith.maximumf %2, %3 : vector<8x512xf32>
    %c0_4 = arith.constant 0 : index
    %c0_5 = arith.constant 0 : index
    %5 = vector.load %arg3[%c0_4, %c0_5] : memref<8x512xf32, #tpu.memory_space<vmem>>, vector<8x512xf32>
    tpu.vector_store %arg3[%c0_4, %c0_5], %4 {strides = array<i32>} : memref<8x512xf32, #tpu.memory_space<vmem>>, vector<8x512xf32>,
    return
  }
  func.func @transform_0(%arg0: i32) -> (i32, i32) {
    %c0_i32 = arith.constant 0 : i32
    %c0_i32_0 = arith.constant 0 : i32
    %c0_i32_1 = arith.constant 0 : i32
    return %c0_i32, %c0_i32_0 : i32, i32
  }
  func.func @transform_1(%arg0: i32) -> (i32, i32) {
    %c0_i32 = arith.constant 0 : i32
    %c0_i32_0 = arith.constant 0 : i32
    %c0_i32_1 = arith.constant 0 : i32
    return %c0_i32, %c0_i32_0 : i32, i32
  }
  func.func @transform_2(%arg0: i32) -> (i32, i32) {
    %c0_i32 = arith.constant 0 : i32
    %c0_i32_0 = arith.constant 0 : i32
    %c0_i32_1 = arith.constant 0 : i32
    return %c0_i32, %c0_i32_0 : i32, i32
  }
}

</mosaic_0001>

<bundles_post_ra>
// kernel: ffc_bn_act_forward.1
= control target key start
LH: loop header
LB: loop body
LE: loop exit
PB: predicated region body
PF: predicated region fallthrough
CT: control target
= control target key end

     0   :  { %v209_v3 = vmov 0.0   ;;  %vm32_vm0 = vcmask 326656   ;;  %s300_s0 = inlined_call_operand.vmem [shape: f32[40,512], index: 0, kind: input, shape index: {}]   ;;  %s301_s1 = inlined_call_operand.vmem [shape: f32[8,40], index: 1, kind: input, shape index: {}]   ;;  %s302_s2 = inlined_call_operand.vmem [shape: f32[8,512], index: 2, kind: output, shape index: {}]  }
   0x1   :  { %v13_v0 = vld [vmem:[%s300_s0 + $0x8] sm:$0xff]  ;;  %v15_v2 = vld [vmem:[%s300_s0 + $0x18] sm:$0xff]  ;;  %100 = vmatprep.mubr.f32.mxu0 %v209_v3  ;;  %171 = vmatprep.mubr.f32.mxu1 %v209_v3  ;;  %v12_v6 = vld [vmem:[%s300_s0] sm:$0xff] }
   0x2   :  { %v17_v1 = vld [vmem:[%s300_s0 + $0x28] sm:$0xff]  ;;  %v19_v5 = vld [vmem:[%s300_s0 + $0x38] sm:$0xff]  ;;  %v16_v7 = vld [vmem:[%s300_s0 + $0x20] sm:$0xff] }
   0x3   :  { %v192_v4 = vpack.c.bf16 %v17_v1, %v13_v0  ;;  %v200_v8 = vpack.c.bf16 %v19_v5, %v15_v2  ;;  %v194_v9 = vpack.c.bf16 %v16_v7, %v12_v6  ;;  %v14_v10 = vld [vmem:[%s300_s0 + $0x10] sm:$0xff]  ;;  %v21_v12 = vld [vmem:[%s300_s0 + $0x48] sm:$0xff]  ;;  %v23_v15 = vld [vmem:[%s300_s0 + $0x58] sm:$0xff] }
   0x4   :  { %v18_v11 = vld [vmem:[%s300_s0 + $0x30] sm:$0xff]  ;;  %v25_v14 = vld [vmem:[%s300_s0 + $0x68] sm:$0xff]  ;;  %v27_v16 = vld [vmem:[%s300_s0 + $0x78] sm:$0xff] }
   0x5   :  { %193 = vmatprep.subr.bf16.mxu0 %v192_v4  ;;  %v202_v13 = vpack.c.bf16 %v18_v11, %v14_v10  ;;  %201 = vmatprep.subr.bf16.mxu1 %v200_v8  ;;  %v196_v17 = vpack.c.bf16 %v25_v14, %v21_v12  ;;  %v204_v18 = vpack.c.bf16 %v27_v16, %v23_v15  ;;  %v20_v19 = vld [vmem:[%s300_s0 + $0x40] sm:$0xff]  ;;  %v22_v21 = vld [vmem:[%s300_s0 + $0x50] sm:$0xff]  ;;  %v29_v25 = vld [vmem:[%s300_s0 + $0x88] sm:$0xff] }
   0x6   :  { %195 = vmatpush1.bf16.msra.mxu0 %v194_v9  ;;  %v24_v20 = vld [vmem:[%s300_s0 + $0x60] sm:$0xff]  ;;  %v26_v23 = vld [vmem:[%s300_s0 + $0x70] sm:$0xff]  ;;  %v31_v26 = vld [vmem:[%s300_s0 + $0x98] sm:$0xff] }
   0x7   :  { %203 = vmatpush1.bf16.msra.mxu1 %v202_v13  ;;  %v198_v22 = vpack.c.bf16 %v24_v20, %v20_v19  ;;  %197 = vmatprep.subr.bf16.mxu0 %v196_v17  ;;  %v206_v24 = vpack.c.bf16 %v26_v23, %v22_v21  ;;  %v28_v27 = vld [vmem:[%s300_s0 + $0x80] sm:$0xff]  ;;  %v30_v28 = vld [vmem:[%s300_s0 + $0x90] sm:$0xff] }
   0x8   :  { %205 = vmatprep.subr.bf16.mxu1 %v204_v18  ;;  %v11_v29 = vld [vmem:[%s301_s1] sm:$0xff] }
   0xa   :  { %199 = vmatpush1.bf16.msra.mxu0 %v198_v22 }
   0xb   :  { %207 = vmatpush1.bf16.msra.mxu1 %v206_v24  ;;  %44 = vmatprep.subr.mxu0 %v29_v25 }
   0xc   :  { %115 = vmatprep.subr.mxu1 %v31_v26 }
   0xe   :  { %45 = vmatpush1.msra.mxu0 %v28_v27 }
   0xf   :  { %116 = vmatpush1.msra.mxu1 %v30_v28  ;;  %190 = vmatmul.mubr.msk.f32.vlgmr.msra.gmra.mrb[0].mxu0 %vm32_vm0, %v11_v29 }
  0x10   :  { %191 = vmatmul.mubr.msk.f32.vlgmr.msra.gmra.mrb[0].mxu1 %vm32_vm0, %v11_v29 }
  0xe2   :  { %v102_v30 = vpop.f32.mrb[0].mxu0 }
  0xe3   :  { %v178_v31 = vmax.f32 %v102_v30, 0.0  ;;  %v173_v32 = vpop.f32.mrb[0].mxu1  ;;  %v104_v33 = vpop.f32.mrb[1].mxu0 }
  0xe4   :  { %v180_v34 = vmax.f32 %v173_v32, 0.0  ;;  %v179_v35 = vmax.f32 %v104_v33, 0.0  ;;  %v175_v36 = vpop.f32.mrb[1].mxu1 }
  0xe5   :  { %182 = vst [vmem:[%s302_s2] sm:$0xff] %v178_v31  ;;  %v181_v37 = vmax.f32 %v175_v36, 0.0 }
  0xe6   :  { %184 = vst [vmem:[%s302_s2 + $0x10] sm:$0xff] %v180_v34  ;;  %183 = vst [vmem:[%s302_s2 + $0x8] sm:$0xff] %v179_v35 }
  0xe7   :  { %185 = vst [vmem:[%s302_s2 + $0x18] sm:$0xff] %v181_v37 }

</bundles_post_ra>
